<compile_context>
chip_gen: v5e
topology: v5e:2x2
jax: 0.10.0
libtpu: 0.0.40
codegen_flags: <defaults>
</compile_context>

<pallas_src>
import functools

import jax
import jax.numpy as jnp
from jax.experimental import pallas as pl
from jax.experimental.pallas import tpu as pltpu


def _center_loss_kernel(x_ref, labels_ref, c_ref, out_ref, acc_ref, *,
                        batch_size, num_classes):
    # x_ref:      (TB, D)  f32  -- block of feature rows
    # labels_ref: (TB, 1)  i32  -- labels for those rows
    # c_ref:      (C, D)   f32  -- VMEM-resident centers (same block every step)
    # out_ref:    (1, 1)   f32  SMEM output (written on last step only)
    # acc_ref:    (TB, 1)  f32  VMEM per-row partial-sum accumulator
    i = pl.program_id(0)
    tb = x_ref.shape[0]

    @pl.when(i == 0)
    def _():
        acc_ref[...] = jnp.zeros_like(acc_ref)

    # Gather centers[labels] with a one-hot matmul on the (otherwise idle) MXU.
    labels = labels_ref[...]                                            # (TB, 1)
    classes = jax.lax.broadcasted_iota(jnp.int32, (tb, num_classes), 1)  # (TB, C)
    one_hot = (labels == classes).astype(jnp.float32)                   # (TB, C)
    gathered = jnp.dot(one_hot, c_ref[...],
                       preferred_element_type=jnp.float32)              # (TB, D)

    # Per-row squared distance on the VPU, clamped per row (parity with the
    # elementwise torch.clamp on the masked distance matrix).
    diff = x_ref[...] - gathered
    d = jnp.sum(diff * diff, axis=-1, keepdims=True)                    # (TB, 1)
    d = jnp.clip(d, jnp.float32(1e-12), jnp.float32(1e12))

    # Mask rows that are batch padding (global row index >= batch_size).
    row = jax.lax.broadcasted_iota(jnp.int32, (tb, 1), 0) + i * tb
    d = jnp.where(row < batch_size, d, jnp.float32(0.0))

    acc_ref[...] += d

    @pl.when(i == pl.num_programs(0) - 1)
    def _():
        # The reference clamps the (C-1) masked-out zeros per sample to 1e-12;
        # add that constant back for exact parity with the PyTorch forward.
        tail = (jnp.float32(batch_size) * jnp.float32(num_classes - 1)
                * jnp.float32(1e-12))
        out_ref[0, 0] = (jnp.sum(acc_ref[...]) + tail) / jnp.float32(batch_size)


def center_loss(x, centers, labels, *, block_rows=256):
    """x: (B, D) f32, centers: (C, D) f32, labels: (B,) int -> scalar f32 loss."""
    B, D = x.shape
    C, D2 = centers.shape
    assert D == D2
    labels_i32 = labels.astype(jnp.int32).reshape(B, 1)

    # Batch tiling: one grid step for small B, otherwise blocks of `block_rows`
    # (multiple of 8 -> full sublane utilization, large DMA transfers).
    if B <= block_rows:
        tb = B
        num_blocks = 1
    else:
        tb = block_rows
        num_blocks = -(-B // tb)

    b_pad = num_blocks * tb
    if b_pad != B:
        x = jnp.pad(x, ((0, b_pad - B), (0, 0)))
        labels_i32 = jnp.pad(labels_i32, ((0, b_pad - B), (0, 0)))

    # Size the scoped-VMEM budget from the chosen blocks (defaults are well below
    # physical capacity); stay under v7x's smaller physical VMEM.
    f32b = 4
    vmem_need = (2 * tb * D * f32b          # x, double-buffered
                 + 2 * tb * f32b            # labels, double-buffered
                 + 2 * C * D * f32b         # resident centers
                 + tb * C * f32b            # one-hot intermediate
                 + 2 * tb * D * f32b        # gathered centers / diff temps
                 + tb * 128 * f32b)         # accumulator (lane-padded)
    vmem_limit = int(min(48 * 1024 * 1024, max(16 * 1024 * 1024, 2 * vmem_need)))
    # TODO(synk): for very large C*D (tens of MiB), block `centers` along C or
    # use a manually double-buffered gather DMA instead of keeping it resident.

    out = pl.pallas_call(
        functools.partial(_center_loss_kernel, batch_size=B, num_classes=C),
        out_shape=jax.ShapeDtypeStruct((1, 1), jnp.float32),
        grid_spec=pltpu.PrefetchScalarGridSpec(
            num_scalar_prefetch=0,
            grid=(num_blocks,),
            in_specs=[
                pl.BlockSpec((tb, D), lambda i: (i, 0)),   # x rows, streamed
                pl.BlockSpec((tb, 1), lambda i: (i, 0)),   # labels, streamed
                pl.BlockSpec((C, D), lambda i: (0, 0)),    # centers, VMEM-resident
            ],
            out_specs=pl.BlockSpec(
                (1, 1), lambda i: (0, 0),
                memory_space=pltpu.MemorySpace.SMEM,
            ),
            scratch_shapes=[pltpu.VMEM((tb, 1), jnp.float32)],
        ),
        compiler_params=pltpu.CompilerParams(
            # Batch axis is a sequential reduction into the shared VMEM
            # accumulator -> must stay "arbitrary".
            # TODO(synk): on v7x split the batch across the two TensorCores with
            # per-core partial outputs and a final add in the wrapper.
            dimension_semantics=("arbitrary",),
            vmem_limit_bytes=vmem_limit,
        ),
    )(x, labels_i32, centers)
    return out[0, 0]


def center_loss_ref(x, centers, labels):
    """Pure-JAX reference matching the PyTorch forward exactly."""
    B = x.shape[0]
    C = centers.shape[0]
    distmat = (
        jnp.sum(x * x, axis=1, keepdims=True)
        + jnp.sum(centers * centers, axis=1, keepdims=True).T
        - 2.0 * (x @ centers.T)
    )
    mask = labels[:, None] == jnp.arange(C, dtype=labels.dtype)[None, :]
    dist = distmat * mask.astype(jnp.float32)
    return jnp.clip(dist, 1e-12, 1e12).sum() / B


if __name__ == "__main__":
    # Small shapes consistent with the module: batch=8, feat_dim=128, num_classes=256.
    B, D, C = 8, 128, 256
    key = jax.random.PRNGKey(0)
    kx, kc, kl = jax.random.split(key, 3)

    x = jax.random.normal(kx, (B, D), dtype=jnp.float32)
    # Deterministic "randn" init for centers (as in nn.Parameter(torch.randn(C, D))).
    centers = jax.random.normal(kc, (C, D), dtype=jnp.float32)
    labels = jax.random.randint(kl, (B,), 0, C, dtype=jnp.int32)

    loss = center_loss(x, centers, labels)
    jax.block_until_ready(loss)

    ref = center_loss_ref(x, centers, labels)
    # (x-c)^2 vs the expanded ||x||^2+||c||^2-2<x,c> form differ only by fp32 rounding.
    assert jnp.allclose(loss, ref, rtol=1e-4, atol=1e-4), (loss, ref)

    print("KERNEL_OK")
</pallas_src>

<mosaic_0001>
module attributes {stable_mosaic.version = 11 : i64} {
  func.func @_center_loss_kernel(%arg0: i32, %arg1: memref<8x128xf32, #tpu.memory_space<vmem>>, %arg2: memref<8x1xi32, #tpu.memory_space<vmem>>, %arg3: memref<256x128xf32, #tpu.memory_space<vmem>>, %arg4: memref<1x1xf32, #tpu.memory_space<smem>>, %arg5: memref<8x1xf32, #tpu.memory_space<vmem>>) attributes {dimension_semantics = [#tpu.dimension_semantics<arbitrary>], iteration_bounds = array<i64: 1>, scalar_prefetch = 0 : i64, scratch_operands = 1 : i64, tpu.core_type = #tpu.core_type<tc>, window_params = [{transform_indices = @transform_0, window_bounds = array<i64: 8, 128>}, {transform_indices = @transform_1, window_bounds = array<i64: 8, 1>}, {pipeline_mode = #tpu.pipeline_mode<synchronous>, transform_indices = @transform_2, window_bounds = array<i64: 256, 128>}, {transform_indices = @transform_3, window_bounds = array<i64: 1, 1>}]} {
    %c0_i32 = arith.constant 0 : i32
    %0 = arith.cmpi eq, %arg0, %c0_i32 : i32
    %1 = arith.extui %0 : i1 to i32
    %c0_i32_0 = arith.constant 0 : i32
    %2 = arith.cmpi ne, %1, %c0_i32_0 : i32
    scf.if %2 {
      %cst_17 = arith.constant 0.000000e+00 : f32
      %34 = vector.broadcast %cst_17 : f32 to vector<8x1xf32>
      %c0_18 = arith.constant 0 : index
      %c0_19 = arith.constant 0 : index
      %35 = vector.load %arg5[%c0_18, %c0_19] : memref<8x1xf32, #tpu.memory_space<vmem>>, vector<8x1xf32>
      tpu.vector_store %arg5[%c0_18, %c0_19], %34 {strides = array<i32>} : memref<8x1xf32, #tpu.memory_space<vmem>>, vector<8x1xf32>,
    } else {
    }
    %c0 = arith.constant 0 : index
    %c0_1 = arith.constant 0 : index
    %3 = vector.load %arg2[%c0, %c0_1] : memref<8x1xi32, #tpu.memory_space<vmem>>, vector<8x1xi32>
    %4 = tpu.iota {dimensions = array<i32: 1>} : vector<8x256xi32>
    %5 = vector.broadcast %3 : vector<8x1xi32> to vector<8x256xi32>
    %6 = arith.cmpi eq, %5, %4 : vector<8x256xi32>
    %7 = arith.extui %6 : vector<8x256xi1> to vector<8x256xi32>
    %8 = arith.sitofp %7 : vector<8x256xi32> to vector<8x256xf32>
    %c0_2 = arith.constant 0 : index
    %c0_3 = arith.constant 0 : index
    %9 = vector.load %arg3[%c0_2, %c0_3] : memref<256x128xf32, #tpu.memory_space<vmem>>, vector<256x128xf32>
    %cst = arith.constant dense<0.000000e+00> : vector<8x128xf32>
    %10 = tpu.matmul %8, %9, %cst {dimension_numbers = #tpu.dot_dimension_numbers<[1], [0], [0], [1], [0, 0, 1, 1], [], []>} : vector<8x256xf32>, vector<256x128xf32>, vector<8x128xf32> -> vector<8x128xf32>
    %c0_4 = arith.constant 0 : index
    %c0_5 = arith.constant 0 : index
    %11 = vector.load %arg1[%c0_4, %c0_5] : memref<8x128xf32, #tpu.memory_space<vmem>>, vector<8x128xf32>
    %12 = arith.subf %11, %10 : vector<8x128xf32>
    %13 = arith.mulf %12, %12 : vector<8x128xf32>
    %cst_6 = arith.constant dense<0.000000e+00> : vector<8xf32>
    %14 = vector.multi_reduction <add>, %13, %cst_6 [1] : vector<8x128xf32> to vector<8xf32>
    %15 = vector.shape_cast %14 : vector<8xf32> to vector<8x1xf32>
    %cst_7 = arith.constant 9.99999996E-13 : f32
    %cst_8 = arith.constant 9.99999995E+11 : f32
    %16 = vector.broadcast %cst_7 : f32 to vector<8x1xf32>
    %17 = arith.maximumf %16, %15 : vector<8x1xf32>
    %18 = vector.broadcast %cst_8 : f32 to vector<8x1xf32>
    %19 = arith.minimumf %18, %17 : vector<8x1xf32>
    %20 = tpu.iota {dimensions = array<i32: 0>} : vector<8x1xi32>
    %c8_i32 = arith.constant 8 : i32
    %21 = arith.muli %arg0, %c8_i32 : i32
    %22 = vector.broadcast %21 : i32 to vector<8x1xi32>
    %23 = arith.addi %20, %22 : vector<8x1xi32>
    %c8_i32_9 = arith.constant 8 : i32
    %24 = vector.broadcast %c8_i32_9 : i32 to vector<8x1xi32>
    %25 = arith.cmpi slt, %23, %24 : vector<8x1xi32>
    %cst_10 = arith.constant 0.000000e+00 : f32
    %26 = vector.broadcast %cst_10 : f32 to vector<8x1xf32>
    %27 = arith.select %25, %19, %26 : vector<8x1xi1>, vector<8x1xf32>
    %c0_11 = arith.constant 0 : index
    %c0_12 = arith.constant 0 : index
    %28 = vector.load %arg5[%c0_11, %c0_12] : memref<8x1xf32, #tpu.memory_space<vmem>>, vector<8x1xf32>
    %29 = arith.addf %28, %27 : vector<8x1xf32>
    %c0_13 = arith.constant 0 : index
    %c0_14 = arith.constant 0 : index
    %30 = vector.load %arg5[%c0_13, %c0_14] : memref<8x1xf32, #tpu.memory_space<vmem>>, vector<8x1xf32>
    tpu.vector_store %arg5[%c0_13, %c0_14], %29 {strides = array<i32>} : memref<8x1xf32, #tpu.memory_space<vmem>>, vector<8x1xf32>,
    %c0_i32_15 = arith.constant 0 : i32
    %31 = arith.cmpi eq, %arg0, %c0_i32_15 : i32
    %32 = arith.extui %31 : i1 to i32
    %c0_i32_16 = arith.constant 0 : i32
    %33 = arith.cmpi ne, %32, %c0_i32_16 : i32
    scf.if %33 {
      %cst_17 = arith.constant 8.000000e+00 : f32
      %cst_18 = arith.constant 2.550000e+02 : f32
      %34 = arith.mulf %cst_17, %cst_18 : f32
      %cst_19 = arith.constant 9.99999996E-13 : f32
      %35 = arith.mulf %34, %cst_19 : f32
      %c0_20 = arith.constant 0 : index
      %c0_21 = arith.constant 0 : index
      %36 = vector.load %arg5[%c0_20, %c0_21] : memref<8x1xf32, #tpu.memory_space<vmem>>, vector<8x1xf32>
      %37 = vector.shape_cast %36 : vector<8x1xf32> to vector<1x8x1xf32>
      %cst_22 = arith.constant dense<0.000000e+00> : vector<1xf32>
      %38 = vector.multi_reduction <add>, %37, %cst_22 [1, 2] : vector<1x8x1xf32> to vector<1xf32>
      %39 = vector.shape_cast %38 : vector<1xf32> to vector<1x1x1xf32>
      %40 = vector.extract %39[0, 0, 0] : f32 from vector<1x1x1xf32>
      %41 = arith.addf %40, %35 : f32
      %cst_23 = arith.constant 8.000000e+00 : f32
      %42 = arith.divf %41, %cst_23 : f32
      %c0_24 = arith.constant 0 : index
      %c0_25 = arith.constant 0 : index
      %43 = memref.load %arg4[%c0_24, %c0_25] : memref<1x1xf32, #tpu.memory_space<smem>>
      memref.store %42, %arg4[%c0_24, %c0_25] : memref<1x1xf32, #tpu.memory_space<smem>>
    } else {
    }
    return
  }
  func.func @transform_0(%arg0: i32) -> (i32, i32) {
    %c0_i32 = arith.constant 0 : i32
    %c0_i32_0 = arith.constant 0 : i32
    return %arg0, %c0_i32 : i32, i32
  }
  func.func @transform_1(%arg0: i32) -> (i32, i32) {
    %c0_i32 = arith.constant 0 : i32
    %c0_i32_0 = arith.constant 0 : i32
    return %arg0, %c0_i32 : i32, i32
  }
  func.func @transform_2(%arg0: i32) -> (i32, i32) {
    %c0_i32 = arith.constant 0 : i32
    %c0_i32_0 = arith.constant 0 : i32
    %c0_i32_1 = arith.constant 0 : i32
    return %c0_i32, %c0_i32_0 : i32, i32
  }
  func.func @transform_3(%arg0: i32) -> (i32, i32) {
    %c0_i32 = arith.constant 0 : i32
    %c0_i32_0 = arith.constant 0 : i32
    %c0_i32_1 = arith.constant 0 : i32
    return %c0_i32, %c0_i32_0 : i32, i32
  }
}

</mosaic_0001>

<bundles_post_ra>
// kernel: tpu_custom_call.1
= control target key start
LH: loop header
LB: loop body
LE: loop exit
PB: predicated region body
PF: predicated region fallthrough
CT: control target
= control target key end

     0   :  { %8 = vsyncpa [#allocation4], 0  ;;  %s281_s0 = inlined_call_operand.vmem [shape: f32[8,128], index: 0, kind: input, shape index: {}]   ;;  %s282_s1 = inlined_call_operand.vmem [shape: s32[8,1], index: 1, kind: input, shape index: {}]   ;;  %s283_s2 = inlined_call_operand.hbm [shape: f32[256,128], index: 2, kind: input, shape index: {}]   ;;  %s284_s3 = inlined_call_operand.hbm [shape: f32[1,1], index: 3, kind: output, shape index: {}]  }
   0x1   :  { %9 = vsyncpa [#allocation5], 0  ;;  %s18_s14 = sshll.u32 %s283_s2, 4  ;;  %s241_s15 = smov [#allocation3]   ;;  %s19_s14 = int_to_ptr.hbm [resolvable:$true] %s18_s14 }
   0x2   :  { %s20_s16 = sshll.u32 %s241_s15, 4  ;;  %s242_s17 = smov 128   ;;  %s21_s16 = int_to_ptr.vmem [resolvable:$true] %s20_s16 }
   0x3   :  { %s243_s18 = smov 8  }
   0x4   :  { %26 = dma.hbm_to_vmem [thread:$0]  %s19_s14, 4096, %s21_s16, [#allocation4], %s242_s17, %s242_s17, %s243_s18  }
   0x5   :  { %237 = dma.done.wait [#allocation4], 4096  }
   0x6   :  { %238 = vsyncadd [#allocation4], 4294963200  ;;  %v244_v0 = vmov 0   ;;  %v37_v1 = vld [vmem:[%s282_s1] sm:$0xff]  ;;  %v64_v4 = vld [vmem:[#allocation3 + $0x70] sm:$0xff]  ;;  %v38_v34 = vlaneseq  ;;  %v245_v38 = vmov 1.0  }
   0x7   :  { %198 = vset.pattern.permute.xlu0 %v244_v0  ;;  %v65_v2 = vld [vmem:[#allocation3 + $0x78] sm:$0xff]  ;;  %v80_v5 = vld [vmem:[#allocation3 + $0xf0] sm:$0xff]  ;;  %v63_v6 = vld [vmem:[#allocation3 + $0x68] sm:$0xff]  ;;  %vm35_vm2 = vcmask 7168   ;;  %v246_v45 = vmov 0.0   ;;  %v247_v53 = vmov 8.0  }
   0x8   :  { %v81_v3 = vld [vmem:[#allocation3 + $0xf8] sm:$0xff]  ;;  %42 = vperm.xlu0 %198, %v37_v1   ;;  %82 = vmatpush.msra.mxu0 %v65_v2  ;;  %v79_v7 = vld [vmem:[#allocation3 + $0xe8] sm:$0xff]  ;;  %v62_v8 = vld [vmem:[#allocation3 + $0x60] sm:$0xff]  ;;  %v39_v35 = vand.u32 127, %v38_v34  ;;  %36 = vst.msk [vmem:[#allocation2] sm:$0xff] %vm35_vm2, %v246_v45  ;;  %199 = vrcp.f32 %v247_v53  ;;  %s171_s22 = sshll.u32 %s284_s3, 4  ;;  %s172_s22 = int_to_ptr.hbm [resolvable:$true] %s171_s22 }
   0x9   :  { %102 = vmatpush.msra.mxu1 %v81_v3  ;;  %v78_v9 = vld [vmem:[#allocation3 + $0xe0] sm:$0xff]  ;;  %v61_v10 = vld [vmem:[#allocation3 + $0x58] sm:$0xff]  ;;  %v60_v12 = vld [vmem:[#allocation3 + $0x50] sm:$0xff]  ;;  %s248_s27 = smov [#allocation6]  }
   0xa   :  { %83 = vmatpush.msra.mxu0 %v64_v4  ;;  %v77_v11 = vld [vmem:[#allocation3 + $0xd8] sm:$0xff]  ;;  %v76_v13 = vld [vmem:[#allocation3 + $0xd0] sm:$0xff]  ;;  %v59_v14 = vld [vmem:[#allocation3 + $0x48] sm:$0xff]  ;;  %v40_v36 = vadd.s32 128, %v39_v35 }
   0xb   :  { %103 = vmatpush.msra.mxu1 %v80_v5  ;;  %v75_v15 = vld [vmem:[#allocation3 + $0xc8] sm:$0xff]  ;;  %v58_v16 = vld [vmem:[#allocation3 + $0x40] sm:$0xff]  ;;  %v57_v18 = vld [vmem:[#allocation3 + $0x38] sm:$0xff] }
   0xc   :  { %84 = vmatpush.msra.mxu0 %v63_v6  ;;  %v74_v17 = vld [vmem:[#allocation3 + $0xc0] sm:$0xff]  ;;  %v73_v19 = vld [vmem:[#allocation3 + $0xb8] sm:$0xff]  ;;  %v56_v20 = vld [vmem:[#allocation3 + $0x30] sm:$0xff] }
   0xd   :  { %104 = vmatpush.msra.mxu1 %v79_v7  ;;  %v72_v21 = vld [vmem:[#allocation3 + $0xb0] sm:$0xff]  ;;  %v55_v22 = vld [vmem:[#allocation3 + $0x28] sm:$0xff]  ;;  %v54_v24 = vld [vmem:[#allocation3 + $0x20] sm:$0xff] }
   0xe   :  { %85 = vmatpush.msra.mxu0 %v62_v8  ;;  %v71_v23 = vld [vmem:[#allocation3 + $0xa8] sm:$0xff]  ;;  %v70_v25 = vld [vmem:[#allocation3 + $0xa0] sm:$0xff]  ;;  %v53_v26 = vld [vmem:[#allocation3 + $0x18] sm:$0xff]  ;;  %v200_v54 = vpop.eup %199 }
   0xf   :  { %105 = vmatpush.msra.mxu1 %v78_v9  ;;  %v69_v27 = vld [vmem:[#allocation3 + $0x98] sm:$0xff]  ;;  %v52_v28 = vld [vmem:[#allocation3 + $0x10] sm:$0xff]  ;;  %v51_v30 = vld [vmem:[#allocation3 + $0x8] sm:$0xff]  ;;  %v156_v55 = vmul.f32 8.0, %v200_v54  ;;  %vm160_vm3 = vweird.f32 %v200_v54 }
  0x10   :  { %86 = vmatpush.msra.mxu0 %v61_v10  ;;  %v68_v29 = vld [vmem:[#allocation3 + $0x90] sm:$0xff]  ;;  %v67_v31 = vld [vmem:[#allocation3 + $0x88] sm:$0xff]  ;;  %v50_v32 = vld [vmem:[#allocation3] sm:$0xff] }
  0x11   :  { %106 = vmatpush.msra.mxu1 %v77_v11  ;;  %v66_v33 = vld [vmem:[#allocation3 + $0x80] sm:$0xff]  ;;  %v122_v41 = vld [vmem:[%s281_s0] sm:$0xff]  ;;  %v157_v56 = vsub.f32 1.0, %v156_v55 }
  0x12   :  { %87 = vmatpush.msra.mxu0 %v60_v12  ;;  %v136_v48 = vld [vmem:[#allocation2] sm:$0xff] }
  0x13   :  { %107 = vmatpush.msra.mxu1 %v76_v13  ;;  %v158_v60 = vmul.f32 %v200_v54, %v157_v56 }
  0x14   :  { %88 = vmatpush.msra.mxu0 %v59_v14 }
  0x15   :  { %108 = vmatpush.msra.mxu1 %v75_v15  ;;  %v159_v63 = vadd.f32 %v200_v54, %v158_v60 }
  0x16   :  { %89 = vmatpush.msra.mxu0 %v58_v16 }
  0x17   :  { %109 = vmatpush.msra.mxu1 %v74_v17  ;;  %v161_v2 = vsel %vm160_vm3, %v200_v54, %v159_v63 }
  0x18   :  { %90 = vmatpush.msra.mxu0 %v57_v18 }
  0x19   :  { %110 = vmatpush.msra.mxu1 %v73_v19 }
  0x1a   :  { %91 = vmatpush.msra.mxu0 %v56_v20 }
  0x1b   :  { %111 = vmatpush.msra.mxu1 %v72_v21 }
  0x1c   :  { %92 = vmatpush.msra.mxu0 %v55_v22 }
  0x1d   :  { %112 = vmatpush.msra.mxu1 %v71_v23 }
  0x1e   :  { %93 = vmatpush.msra.mxu0 %v54_v24 }
  0x1f   :  { %113 = vmatpush.msra.mxu1 %v70_v25 }
  0x20   :  { %94 = vmatpush.msra.mxu0 %v53_v26 }
  0x21   :  { %114 = vmatpush.msra.mxu1 %v69_v27 }
  0x22   :  { %95 = vmatpush.msra.mxu0 %v52_v28 }
  0x23   :  { %115 = vmatpush.msra.mxu1 %v68_v29 }
  0x24   :  { %96 = vmatpush.msra.mxu0 %v51_v30 }
  0x25   :  { %116 = vmatpush.msra.mxu1 %v67_v31 }
  0x26   :  { %97 = vmatpush.msra.mxu0 %v50_v32 }
  0x27   :  { %117 = vmatpush.msra.mxu1 %v66_v33 }
  0x7a   :  { %v43_v37 = vpop.permute.xlu0 %42 }
  0x7b   :  { %vm44_vm0 = vcmp.eq.s32.totalorder %v43_v37, %v39_v35  ;;  %vm45_vm1 = vcmp.eq.s32.totalorder %v43_v37, %v40_v36 }
  0x7c   :  { %184 = vmatmul.msk.f32.vlgmr.msra.gmra.mxu0 %vm44_vm0, %v245_v38  ;;  %185 = vmatmul.msk.f32.vlgmr.msra.gmra.mxu1 %vm45_vm1, %v245_v38 }
  0xf9   :  { %v99_v39 = vpop.f32.mrf.mxu0  ;;  %v119_v40 = vpop.f32.mrf.mxu1 }
  0xfa   :  { %v120_v42 = vadd.f32 %v119_v40, %v99_v39 }
  0xfc   :  { %v123_v43 = vsub.f32 %v122_v41, %v120_v42 }
  0xfe   :  { %v124_v44 = vmul.f32 %v123_v43, %v123_v43 }
 0x100   :  { %125 = vadd.xlane.f32.xlu0 %v124_v44 }
 0x173   :  { %v126_v46 = vpop.xlane.xlu0 %125 }
 0x174   :  { %v127_v47 = vmax.f32 %v126_v46, 1e-12 }
 0x176   :  { %v128_v49 = vmin.f32 %v127_v47, 1e+12 }
 0x178   :  { %v137_v50 = vadd.f32 %v136_v48, %v128_v49 }
 0x17a   :  { %139 = vst.msk [vmem:[#allocation2] sm:$0xff] %vm35_vm2, %v137_v50 }
 0x181   :  { %v143_v51 = vld [vmem:[#allocation2] sm:$0xff] }
 0x182   :  { %v144_v52 = vsel %vm35_vm2, %v143_v51, 0.0 }
 0x183   :  { %145 = vadd.xlane.f32.xlu1 %v144_v52 }
 0x1f6   :  { %v146_v57 = vpop.xlane.xlu1 %145 }
 0x1f7   :  { %v147_v58 = vrot.slane %v146_v57, 4 }
 0x1f9   :  { %v148_v59 = vadd.f32 %v147_v58, %v146_v57 }
 0x1fb   :  { %v149_v61 = vrot.slane %v148_v59, 2 }
 0x1fd   :  { %v150_v62 = vadd.f32 %v149_v61, %v148_v59 }
 0x1ff   :  { %v151_v0 = vrot.slane %v150_v62, 1 }
 0x201   :  { %v152_v1 = vadd.f32 %v151_v0, %v150_v62 }
 0x203   :  { %186 = vpush %v152_v1 }
 0x204   :  { %188 = vpush %v161_v2 }
 0x234   :  { %s187_s23 = spop %186 }
 0x235   :  { %s154_s24 = sadd.f32 2.04e-09, %s187_s23  ;;  %s189_s25 = spop %188 }
 0x237   :  { %s163_s26 = smul.f32 %s189_s25, %s154_s24 }
 0x239   :  { %165 = sst [smem:[#allocation6]] %s163_s26 }
 0x23a   :  { %174 = dma.smem_to_hbm %s248_s27, 16, %s172_s22, [#allocation5]  }
 0x23b   :  { %239 = dma.done.wait [#allocation5], 16  }
 0x23c   :  { %240 = vsyncadd [#allocation5], 4294967280 }
 0x23d   :  { %179 = sfence }
 0x23e   :  { %180 = vsyncpa [#allocation4], 1 }
 0x23f   :  { %181 = vsyncpa [#allocation5], 1 }

</bundles_post_ra>
